<compile_context>
chip_gen: v5e
topology: v5e:2x2
jax: 0.10.0
libtpu: 0.0.40
codegen_flags: <defaults>
</compile_context>

<pallas_src>
import math

import jax
import jax.numpy as jnp
from jax.experimental import pallas as pl
from jax.experimental.pallas import tpu as pltpu

_LANES = 128
_MAX_PACK_LANES = 512                      # cap on the lcm-packed slab width
_TARGET_BLOCK_BYTES = 2 * 1024 * 1024      # ~2 MiB per stream per buffer


def _round_up(x, m):
    return ((x + m - 1) // m) * m


def _make_kernel(packed):
    def kernel(xe_ref, xh_ref, se_ref, sh_ref, c_ref, out_ref):
        xe = xe_ref[...].astype(jnp.float32)      # (TM, lanes) packed v_e rows
        xh = xh_ref[...].astype(jnp.float32)      # (TM, lanes) packed v_h rows
        c_e = c_ref[0]                            # SMEM scalars
        c_h = c_ref[1]
        if packed:
            # Segment matmul on the otherwise-idle MXU: applies the folded
            # weight vector and broadcasts each E-wide group's logit across
            # its lanes.  bf16 operands keep this off the critical path on
            # v5e; accumulation is f32.
            logit_e = jnp.dot(xe.astype(jnp.bfloat16), se_ref[...],
                              preferred_element_type=jnp.float32) + c_e
            logit_h = jnp.dot(xh.astype(jnp.bfloat16), sh_ref[...],
                              preferred_element_type=jnp.float32) + c_h
        else:
            # One original row per slab row: VPU multiply + lane reduce (f32).
            logit_e = jnp.sum(xe * se_ref[...], axis=-1, keepdims=True) + c_e
            logit_h = jnp.sum(xh * sh_ref[...], axis=-1, keepdims=True) + c_h
        fused = jax.nn.sigmoid(logit_e) * xe + jax.nn.sigmoid(logit_h) * xh
        out_ref[...] = fused.astype(out_ref.dtype)
    return kernel


def cross_manifold_attention(euclidean_emb, hyperbolic_emb, params, *, tm=None):
    E = euclidean_emb.shape[-1]
    H = hyperbolic_emb.shape[-1]
    assert E == H, "module semantics require euclidean_dim == hyperbolic_dim"

    lead = euclidean_emb.shape[:-1]
    M = int(math.prod(lead)) if lead else 1
    dtype = euclidean_emb.dtype
    itemsize = jnp.dtype(dtype).itemsize

    # ----- algebraic fold (wrapper-side, exact, tiny) -----------------------
    # torch: q = x @ W.T + b ; logit = cat(q, q) @ attn_w.T + attn_b
    #      = x @ (W.T @ (wa[:E] + wa[E:])) + (b @ (wa[:E] + wa[E:]) + ba)
    wa = params["attn_w"].astype(jnp.float32)[0]                    # (2E,)
    w_sum = wa[:E] + wa[E:]                                         # (E,)
    ba = params["attn_b"].astype(jnp.float32)[0]
    v_e = params["W_euclidean_w"].astype(jnp.float32).T @ w_sum     # (E,)
    c_e = params["W_euclidean_b"].astype(jnp.float32) @ w_sum + ba  # scalar
    v_h = params["W_hyperbolic_w"].astype(jnp.float32).T @ w_sum    # (H,)
    c_h = params["W_hyperbolic_b"].astype(jnp.float32) @ w_sum + ba
    c = jnp.stack([c_e, c_h]).astype(jnp.float32)                   # (2,) -> SMEM

    # ----- lane-dense slab packing: zero-copy (row-major reshape only) ------
    lanes_pack = (E * _LANES) // math.gcd(E, _LANES)                # lcm(E,128)
    g = lanes_pack // E
    packed = (g > 1) and (lanes_pack <= _MAX_PACK_LANES) and (M % g == 0)
    if packed:
        lanes = lanes_pack
        idx = jnp.arange(lanes)
        seg = (idx[:, None] // E) == (idx[None, :] // E)            # block-diag mask
        se = jnp.where(seg, jnp.tile(v_e, g)[:, None], 0.0).astype(jnp.bfloat16)
        sh = jnp.where(seg, jnp.tile(v_h, g)[:, None], 0.0).astype(jnp.bfloat16)
        w_shape = (lanes, lanes)
    else:
        # TODO(synk): when E needs a >512-lane slab (e.g. E=112, 200) or M is
        # not a multiple of g, we fall back to E-wide blocks; for E not a
        # multiple of 128 this leaves masked lane stores (still correct).
        g, lanes = 1, E
        se = v_e.reshape(1, lanes).astype(jnp.float32)
        sh = v_h.reshape(1, lanes).astype(jnp.float32)
        w_shape = (1, lanes)

    packed_rows = M // g
    xe = euclidean_emb.reshape(packed_rows, lanes)      # free (contiguous view)
    xh = hyperbolic_emb.reshape(packed_rows, lanes)

    # ----- tiling: ~2 MiB / stream / buffer, >=4 grid steps when possible ---
    if tm is None:
        tm = max(8, (_TARGET_BLOCK_BYTES // (lanes * itemsize)) // 8 * 8)
    tm_eff = min(tm, _round_up(pl.cdiv(packed_rows, 4), 8))
    tm_eff = max(8, (tm_eff // 8) * 8)
    if tm_eff >= packed_rows:
        tm_eff = packed_rows                            # single full block
    grid = (pl.cdiv(packed_rows, tm_eff),)              # ragged last block OK

    out = pl.pallas_call(
        _make_kernel(packed),
        out_shape=jax.ShapeDtypeStruct((packed_rows, lanes), dtype),
        grid=grid,
        in_specs=[
            pl.BlockSpec((tm_eff, lanes), lambda i: (i, 0)),        # euclidean rows
            pl.BlockSpec((tm_eff, lanes), lambda i: (i, 0)),        # hyperbolic rows
            pl.BlockSpec(w_shape, lambda i: (0, 0)),                # folded eucl. weights
            pl.BlockSpec(w_shape, lambda i: (0, 0)),                # folded hyp. weights
            pl.BlockSpec(memory_space=pltpu.MemorySpace.SMEM),      # (c_e, c_h) scalars
        ],
        out_specs=pl.BlockSpec((tm_eff, lanes), lambda i: (i, 0)),
        compiler_params=pltpu.CompilerParams(
            dimension_semantics=("parallel",),
            vmem_limit_bytes=32 * 1024 * 1024),
    )(xe, xh, se, sh, c)

    return out.reshape(*lead, E)


def init_params(key, euclidean_dim, hyperbolic_dim):
    """Deterministic torch.nn.Linear-style (uniform +/- 1/sqrt(fan_in)) init."""
    k = jax.random.split(key, 6)

    def u(kk, shape, fan_in):
        b = 1.0 / math.sqrt(fan_in)
        return jax.random.uniform(kk, shape, jnp.float32, -b, b)

    return {
        "W_euclidean_w": u(k[0], (euclidean_dim, euclidean_dim), euclidean_dim),
        "W_euclidean_b": u(k[1], (euclidean_dim,), euclidean_dim),
        "W_hyperbolic_w": u(k[2], (hyperbolic_dim, hyperbolic_dim), hyperbolic_dim),
        "W_hyperbolic_b": u(k[3], (hyperbolic_dim,), hyperbolic_dim),
        "attn_w": u(k[4], (1, euclidean_dim + hyperbolic_dim),
                    euclidean_dim + hyperbolic_dim),
        "attn_b": u(k[5], (1,), euclidean_dim + hyperbolic_dim),
    }


def _reference(xe, xh, p):
    q_e = xe @ p["W_euclidean_w"].T + p["W_euclidean_b"]
    q_h = xh @ p["W_hyperbolic_w"].T + p["W_hyperbolic_b"]
    ae = jax.nn.sigmoid(jnp.concatenate([q_e, q_e], -1) @ p["attn_w"].T + p["attn_b"])
    ah = jax.nn.sigmoid(jnp.concatenate([q_h, q_h], -1) @ p["attn_w"].T + p["attn_b"])
    return ae * xe + ah * xh


if __name__ == "__main__":
    B, S, E, H = 2, 8, 32, 32
    key = jax.random.PRNGKey(0)
    k_e, k_h, k_p = jax.random.split(key, 3)

    euclidean_emb = jax.random.normal(k_e, (B, S, E), jnp.float32)
    hyperbolic_emb = jax.random.normal(k_h, (B, S, H), jnp.float32)
    params = init_params(k_p, E, H)

    fn = jax.jit(cross_manifold_attention)
    fused = jax.block_until_ready(fn(euclidean_emb, hyperbolic_emb, params))

    ref = _reference(euclidean_emb, hyperbolic_emb, params)
    assert fused.shape == (B, S, E)
    err = float(jnp.max(jnp.abs(fused - ref)))
    # Tolerance loosened vs the f32-only version: the logit matmul runs in
    # bf16 on the MXU (sigmoid keeps the resulting error small).
    assert jnp.allclose(fused, ref, atol=2e-2, rtol=2e-2), err

    print("KERNEL_OK")
</pallas_src>

<mosaic_0001>
module attributes {stable_mosaic.version = 11 : i64} {
  func.func @kernel(%arg0: i32, %arg1: memref<4x128xf32, #tpu.memory_space<vmem>>, %arg2: memref<4x128xf32, #tpu.memory_space<vmem>>, %arg3: memref<128x128xbf16, #tpu.memory_space<vmem>>, %arg4: memref<128x128xbf16, #tpu.memory_space<vmem>>, %arg5: memref<2xf32, #tpu.memory_space<smem>>, %arg6: memref<4x128xf32, #tpu.memory_space<vmem>>) attributes {dimension_semantics = [#tpu.dimension_semantics<parallel>], iteration_bounds = array<i64: 1>, scalar_prefetch = 0 : i64, scratch_operands = 0 : i64, tpu.core_type = #tpu.core_type<tc>, window_params = [{transform_indices = @transform_0, window_bounds = array<i64: 4, 128>}, {transform_indices = @transform_1, window_bounds = array<i64: 4, 128>}, {pipeline_mode = #tpu.pipeline_mode<synchronous>, transform_indices = @transform_2, window_bounds = array<i64: 128, 128>}, {pipeline_mode = #tpu.pipeline_mode<synchronous>, transform_indices = @transform_3, window_bounds = array<i64: 128, 128>}, {transform_indices = @transform_4, window_bounds = array<i64: 2>}, {transform_indices = @transform_5, window_bounds = array<i64: 4, 128>}]} {
    %c0 = arith.constant 0 : index
    %c0_0 = arith.constant 0 : index
    %0 = vector.load %arg1[%c0, %c0_0] : memref<4x128xf32, #tpu.memory_space<vmem>>, vector<4x128xf32>
    %c0_1 = arith.constant 0 : index
    %c0_2 = arith.constant 0 : index
    %1 = vector.load %arg2[%c0_1, %c0_2] : memref<4x128xf32, #tpu.memory_space<vmem>>, vector<4x128xf32>
    %c0_3 = arith.constant 0 : index
    %2 = memref.load %arg5[%c0_3] : memref<2xf32, #tpu.memory_space<smem>>
    %c1 = arith.constant 1 : index
    %3 = memref.load %arg5[%c1] : memref<2xf32, #tpu.memory_space<smem>>
    %4 = arith.truncf %0 : vector<4x128xf32> to vector<4x128xbf16>
    %c0_4 = arith.constant 0 : index
    %c0_5 = arith.constant 0 : index
    %5 = vector.load %arg3[%c0_4, %c0_5] : memref<128x128xbf16, #tpu.memory_space<vmem>>, vector<128x128xbf16>
    %cst = arith.constant dense<0.000000e+00> : vector<4x128xf32>
    %6 = tpu.matmul %4, %5, %cst {dimension_numbers = #tpu.dot_dimension_numbers<[1], [0], [0], [1], [0, 0, 1, 1], [], []>} : vector<4x128xbf16>, vector<128x128xbf16>, vector<4x128xf32> -> vector<4x128xf32>
    %7 = vector.broadcast %2 : f32 to vector<4x128xf32>
    %8 = arith.addf %6, %7 : vector<4x128xf32>
    %9 = arith.truncf %1 : vector<4x128xf32> to vector<4x128xbf16>
    %c0_6 = arith.constant 0 : index
    %c0_7 = arith.constant 0 : index
    %10 = vector.load %arg4[%c0_6, %c0_7] : memref<128x128xbf16, #tpu.memory_space<vmem>>, vector<128x128xbf16>
    %cst_8 = arith.constant dense<0.000000e+00> : vector<4x128xf32>
    %11 = tpu.matmul %9, %10, %cst_8 {dimension_numbers = #tpu.dot_dimension_numbers<[1], [0], [0], [1], [0, 0, 1, 1], [], []>} : vector<4x128xbf16>, vector<128x128xbf16>, vector<4x128xf32> -> vector<4x128xf32>
    %12 = vector.broadcast %3 : f32 to vector<4x128xf32>
    %13 = arith.addf %11, %12 : vector<4x128xf32>
    %14 = arith.negf %8 : vector<4x128xf32>
    %15 = math.exp %14 : vector<4x128xf32>
    %cst_9 = arith.constant 1.000000e+00 : f32
    %16 = vector.broadcast %cst_9 : f32 to vector<4x128xf32>
    %17 = arith.addf %16, %15 : vector<4x128xf32>
    %18 = arith.divf %16, %17 : vector<4x128xf32>
    %19 = arith.mulf %18, %0 : vector<4x128xf32>
    %20 = arith.negf %13 : vector<4x128xf32>
    %21 = math.exp %20 : vector<4x128xf32>
    %cst_10 = arith.constant 1.000000e+00 : f32
    %22 = vector.broadcast %cst_10 : f32 to vector<4x128xf32>
    %23 = arith.addf %22, %21 : vector<4x128xf32>
    %24 = arith.divf %22, %23 : vector<4x128xf32>
    %25 = arith.mulf %24, %1 : vector<4x128xf32>
    %26 = arith.addf %19, %25 : vector<4x128xf32>
    %c0_11 = arith.constant 0 : index
    %c0_12 = arith.constant 0 : index
    %27 = vector.load %arg6[%c0_11, %c0_12] : memref<4x128xf32, #tpu.memory_space<vmem>>, vector<4x128xf32>
    tpu.vector_store %arg6[%c0_11, %c0_12], %26 {strides = array<i32>} : memref<4x128xf32, #tpu.memory_space<vmem>>, vector<4x128xf32>,
    return
  }
  func.func @transform_0(%arg0: i32) -> (i32, i32) {
    %c0_i32 = arith.constant 0 : i32
    %c0_i32_0 = arith.constant 0 : i32
    return %arg0, %c0_i32 : i32, i32
  }
  func.func @transform_1(%arg0: i32) -> (i32, i32) {
    %c0_i32 = arith.constant 0 : i32
    %c0_i32_0 = arith.constant 0 : i32
    return %arg0, %c0_i32 : i32, i32
  }
  func.func @transform_2(%arg0: i32) -> (i32, i32) {
    %c0_i32 = arith.constant 0 : i32
    %c0_i32_0 = arith.constant 0 : i32
    %c0_i32_1 = arith.constant 0 : i32
    return %c0_i32, %c0_i32_0 : i32, i32
  }
  func.func @transform_3(%arg0: i32) -> (i32, i32) {
    %c0_i32 = arith.constant 0 : i32
    %c0_i32_0 = arith.constant 0 : i32
    %c0_i32_1 = arith.constant 0 : i32
    return %c0_i32, %c0_i32_0 : i32, i32
  }
  func.func @transform_4(%arg0: i32) -> i32 {
    %c0_i32 = arith.constant 0 : i32
    %c0_i32_0 = arith.constant 0 : i32
    return %c0_i32 : i32
  }
  func.func @transform_5(%arg0: i32) -> (i32, i32) {
    %c0_i32 = arith.constant 0 : i32
    %c0_i32_0 = arith.constant 0 : i32
    return %arg0, %c0_i32 : i32, i32
  }
}

</mosaic_0001>

<bundles_post_ra>
// kernel: tile.18
= control target key start
LH: loop header
LB: loop body
LE: loop exit
PB: predicated region body
PF: predicated region fallthrough
CT: control target
= control target key end

     0   :  { %s27_s0 = inlined_call_operand.vmem [shape: bf16[32], index: 0, kind: input, shape index: {}]   ;;  %s28_s1 = inlined_call_operand.vmem [shape: bf16[4,32], index: 1, kind: output, shape index: {}]  }
   0x1   :  { %v4_v0 = vld [vmem:[%s27_s0] ss:$0 sm:$0xff] }
   0x2   :  { %v5_v1 = vunpack.i.l.bf16 %v4_v0 }
   0x4   :  { %v9_v2 = vpack.c.bf16 0.0, %v5_v1 }
   0x6   :  { %10 = vst [vmem:[%s28_s1] sm:$0x3] %v9_v2 }

// kernel: cross_manifold_attention.1
= control target key start
LH: loop header
LB: loop body
LE: loop exit
PB: predicated region body
PF: predicated region fallthrough
CT: control target
= control target key end

     0   :  { %10 = vsyncpa [#allocation3], 0  ;;  %s348_s21 = smov [#allocation2]   ;;  %s439_s0 = inlined_call_operand.vmem [shape: f32[4,128], index: 0, kind: input, shape index: {}]   ;;  %s440_s1 = inlined_call_operand.vmem [shape: f32[4,128], index: 1, kind: input, shape index: {}]   ;;  %s441_s2 = inlined_call_operand.vmem [shape: bf16[128,128], index: 2, kind: input, shape index: {}]   ;;  %s442_s3 = inlined_call_operand.vmem [shape: bf16[128,128], index: 3, kind: input, shape index: {}]   ;;  %s443_s4 = inlined_call_operand.vmem [shape: f32[2], index: 4, kind: input, shape index: {}]   ;;  %s444_s5 = inlined_call_operand.vmem [shape: f32[4,128], index: 5, kind: output, shape index: {}]  }
   0x1   :  { %s24_s20 = sshll.u32 %s443_s4, 4  ;;  %s25_s20 = int_to_ptr.vmem [resolvable:$true] %s24_s20 }
   0x2   :  { %27 = dma.vmem_to_smem %s25_s20, 16, %s348_s21, [#allocation3]  }
   0x3   :  { %346 = dma.done.wait [#allocation3], 16  }
   0x4   :  { %347 = vsyncadd [#allocation3], 4294967280 }
   0x5   :  { %32 = sfence }
   0x6   :  { %v316_v0 = vld [vmem:[%s441_s2 + $0x38] sm:$0xff]  ;;  %v315_v2 = vld [vmem:[%s441_s2 + $0x30] sm:$0xff]  ;;  %v314_v4 = vld [vmem:[%s441_s2 + $0x28] sm:$0xff]  ;;  %s242_s6 = sld [smem:[#allocation2 + $0x1]] }
   0x7   :  { %v324_v1 = vld [vmem:[%s442_s3 + $0x38] sm:$0xff]  ;;  %103 = vmatpush.bf16.msra.mxu0 %v316_v0  ;;  %v323_v3 = vld [vmem:[%s442_s3 + $0x30] sm:$0xff]  ;;  %v322_v5 = vld [vmem:[%s442_s3 + $0x28] sm:$0xff] }
   0x8   :  { %182 = vmatpush.bf16.msra.mxu1 %v324_v1  ;;  %v313_v6 = vld [vmem:[%s441_s2 + $0x20] sm:$0xff]  ;;  %v312_v8 = vld [vmem:[%s441_s2 + $0x18] sm:$0xff]  ;;  %v311_v10 = vld [vmem:[%s441_s2 + $0x10] sm:$0xff] }
   0x9   :  { %v321_v7 = vld [vmem:[%s442_s3 + $0x20] sm:$0xff]  ;;  %v320_v9 = vld [vmem:[%s442_s3 + $0x18] sm:$0xff]  ;;  %v319_v11 = vld [vmem:[%s442_s3 + $0x10] sm:$0xff] }
   0xa   :  { %v310_v12 = vld [vmem:[%s441_s2 + $0x8] sm:$0xff]  ;;  %v309_v14 = vld [vmem:[%s441_s2] sm:$0xff]  ;;  %s35_s2 = sld [smem:[#allocation2]] }
   0xb   :  { %104 = vmatpush.bf16.msra.mxu0 %v315_v2  ;;  %v318_v13 = vld [vmem:[%s442_s3 + $0x8] sm:$0xff]  ;;  %v317_v15 = vld [vmem:[%s442_s3] sm:$0xff] }
   0xc   :  { %183 = vmatpush.bf16.msra.mxu1 %v323_v3  ;;  %v33_v16 = vld [vmem:[%s439_s0] sm:$0xf]  ;;  %v133_v21 = vstv %s242_s6 }
   0xd   :  { %v34_v17 = vld [vmem:[%s440_s1] sm:$0xf]  ;;  %v37_v18 = vpack.c.bf16 %v33_v16, %v33_v16 }
   0xe   :  { %v116_v19 = vpack.c.bf16 %v34_v17, %v34_v17 }
   0xf   :  { %105 = vmatpush.bf16.msra.mxu0 %v314_v4 }
  0x10   :  { %184 = vmatpush.bf16.msra.mxu1 %v322_v5  ;;  %v54_v20 = vstv %s35_s2 }
  0x13   :  { %106 = vmatpush.bf16.msra.mxu0 %v313_v6 }
  0x14   :  { %185 = vmatpush.bf16.msra.mxu1 %v321_v7 }
  0x17   :  { %107 = vmatpush.bf16.msra.mxu0 %v312_v8 }
  0x18   :  { %186 = vmatpush.bf16.msra.mxu1 %v320_v9 }
  0x1b   :  { %108 = vmatpush.bf16.msra.mxu0 %v311_v10 }
  0x1c   :  { %187 = vmatpush.bf16.msra.mxu1 %v319_v11 }
  0x1f   :  { %109 = vmatpush.bf16.msra.mxu0 %v310_v12 }
  0x20   :  { %188 = vmatpush.bf16.msra.mxu1 %v318_v13 }
  0x23   :  { %110 = vmatpush.bf16.msra.mxu0 %v309_v14 }
  0x24   :  { %189 = vmatpush.bf16.msra.mxu1 %v317_v15 }
  0x26   :  { %111 = vmatmul.bf16.vlgmr.msra.gmra.mxu0 %v37_v18 }
  0x27   :  { %190 = vmatmul.bf16.vlgmr.msra.gmra.mxu1 %v116_v19 }
  0xa3   :  { %v112_v22 = vpop.f32.mrf.mxu0 }
  0xa4   :  { %v191_v23 = vpop.f32.mrf.mxu1  ;;  %v113_v24 = vadd.f32 %v112_v22, %v54_v20 }
  0xa5   :  { %v192_v25 = vadd.f32 %v191_v23, %v133_v21 }
  0xa6   :  { %v307_v26 = vmul.f32 -1.442695, %v113_v24 }
  0xa7   :  { %v308_v27 = vmul.f32 -1.442695, %v192_v25 }
  0xa8   :  { %326 = vpow2.f32 %v307_v26 }
  0xa9   :  { %328 = vpow2.f32 %v308_v27 }
  0xab   :  { %v114_v28 = vpop.f32.mrf.mxu0 }
  0xac   :  { %v193_v29 = vpop.f32.mrf.mxu1 }
  0xae   :  { %v327_v30 = vpop.eup %326 }
  0xaf   :  { %v329_v31 = vpop.eup %328  ;;  %v198_v32 = vadd.f32 1.0, %v327_v30 }
  0xb0   :  { %v218_v33 = vadd.f32 1.0, %v329_v31 }
  0xb1   :  { %330 = vrcp.f32 %v198_v32  ;;  %v210_v39 = vand.u32 2147483648, %v198_v32  ;;  %v208_v42 = vand.u32 2147483647, %v198_v32  ;;  %vm204_vm2 = vweird.f32 %v198_v32 }
  0xb2   :  { %332 = vrcp.f32 %v218_v33  ;;  %v230_v43 = vand.u32 2147483648, %v218_v33  ;;  %v228_v45 = vand.u32 2147483647, %v218_v33  ;;  %vm224_vm4 = vweird.f32 %v218_v33 }
  0xb3   :  { %v211_v47 = vor.u32 1.1754944e-38, %v210_v39  ;;  %vm209_vm5 = vcmp.eq.f32.partialorder %v208_v42, 8.507059e+37 }
  0xb4   :  { %v231_v50 = vor.u32 1.1754944e-38, %v230_v43  ;;  %vm229_vm7 = vcmp.eq.f32.partialorder %v228_v45, 8.507059e+37 }
  0xb7   :  { %v331_v34 = vpop.eup %330 }
  0xb8   :  { %v333_v35 = vpop.eup %332  ;;  %v200_v36 = vmul.f32 %v331_v34, %v198_v32  ;;  %vm205_vm0 = vweird.f32 %v331_v34 }
  0xb9   :  { %v220_v37 = vmul.f32 %v333_v35, %v218_v33  ;;  %vm225_vm1 = vweird.f32 %v333_v35  ;;  %vm206_vm3 = vmor %vm204_vm2, %vm205_vm0 }
  0xba   :  { %v201_v38 = vsub.f32 1.0, %v200_v36  ;;  %vm226_vm6 = vmor %vm224_vm4, %vm225_vm1 }
  0xbb   :  { %v221_v40 = vsub.f32 1.0, %v220_v37 }
  0xbc   :  { %v202_v41 = vmul.f32 %v331_v34, %v201_v38 }
  0xbd   :  { %v222_v44 = vmul.f32 %v333_v35, %v221_v40 }
  0xbe   :  { %v203_v46 = vadd.f32 %v331_v34, %v202_v41 }
  0xbf   :  { %v223_v48 = vadd.f32 %v333_v35, %v222_v44 }
  0xc0   :  { %v207_v49 = vsel %vm206_vm3, %v331_v34, %v203_v46 }
  0xc1   :  { %v212_v51 = vsel %vm209_vm5, %v211_v47, %v207_v49  ;;  %v227_v52 = vsel %vm226_vm6, %v333_v35, %v223_v48 }
  0xc2   :  { %v214_v53 = vmul.f32 %v212_v51, %v33_v16  ;;  %v232_v54 = vsel %vm229_vm7, %v231_v50, %v227_v52 }
  0xc3   :  { %v234_v55 = vmul.f32 %v232_v54, %v34_v17 }
  0xc5   :  { %v235_v56 = vadd.f32 %v234_v55, %v214_v53 }
  0xc7   :  { %236 = vst [vmem:[%s444_s5] sm:$0xf] %v235_v56 }
  0xc8   :  { %241 = vsyncpa [#allocation3], 1 }

</bundles_post_ra>
